<compile_context>
chip_gen: v5e
topology: v5e:2x2
jax: 0.10.0
libtpu: 0.0.40
codegen_flags: <defaults>
</compile_context>

<pallas_src>
import functools

import jax
import jax.numpy as jnp
import numpy as np
from jax import lax
from jax.experimental import pallas as pl
from jax.experimental.pallas import tpu as pltpu


def _round_up(a, b):
    return ((a + b - 1) // b) * b


# ----------------------------------------------------------------------------
# Pass 1: conv-as-matmul (lane-dense) + per-channel partial batch statistics.
# Grid = (splits, tiles): 'splits' is parallel (megacore on v7x), 'tiles' is the
# sequential accumulation axis.  Outputs are per-split partial sums.
# ----------------------------------------------------------------------------
def conv_stats_kernel(w_ref, p_ref, psum_ref, psq_ref):
    t = pl.program_id(1)

    @pl.when(t == 0)
    def _():
        psum_ref[...] = jnp.zeros_like(psum_ref)
        psq_ref[...] = jnp.zeros_like(psq_ref)

    # (C, 27) @ (27, tm) -> (C, tm): M on lanes (lane-dense).
    y = jnp.dot(w_ref[...], p_ref[...], preferred_element_type=jnp.float32)
    psum_ref[...] += jnp.sum(y, axis=1, keepdims=True)[None, :, :]
    psq_ref[...] += jnp.sum(y * y, axis=1, keepdims=True)[None, :, :]


# ----------------------------------------------------------------------------
# Pass 2: recompute the conv tile (K=27, negligible FLOPs), fold BN into a
# per-channel scale/shift, ReLU, lane-dense store.  Fully parallel grid.
# ----------------------------------------------------------------------------
def conv_bn_relu_kernel(w_ref, psum_ref, psq_ref, g_ref, b_ref, p_ref, o_ref,
                        *, inv_m, eps):
    s = jnp.sum(psum_ref[...], axis=0)            # (C, 1) combine per-core partials
    q = jnp.sum(psq_ref[...], axis=0)             # (C, 1)
    mean = s * inv_m
    var = q * inv_m - mean * mean                 # biased variance (PyTorch BN fwd)
    scale = g_ref[...] * lax.rsqrt(var + eps)     # (C, 1)
    shift = b_ref[...] - mean * scale             # (C, 1)
    y = jnp.dot(w_ref[...], p_ref[...], preferred_element_type=jnp.float32)
    o_ref[...] = jnp.maximum(y * scale + shift, 0.0)


# ----------------------------------------------------------------------------
# Wrapper
# ----------------------------------------------------------------------------
def initial_conv_block(x_nchw, w_hwio, bias, gamma, beta, *, eps=1e-5, tm=2048):
    """Forward pass of InitialConvBlock.

    x_nchw : (N, 3, H, W) float32
    w_hwio : (3, 3, 3, C_out) float32   conv kernel, HWIO
    bias   : (C_out,) float32           (unused: cancelled exactly by training BN)
    gamma, beta : (C_out,) float32      BatchNorm affine params
    returns (N, C_out, H, W) float32
    """
    N, Cin, H, W = x_nchw.shape
    assert Cin == 3
    C = w_hwio.shape[-1]
    M = N * H * W

    # Tile sizing: large tiles so per-grid-step overhead (~0.35us) is amortized;
    # lane dim stays a multiple of 128.  Pad M up to a multiple of the tile.
    tm_eff = min(tm, _round_up(M, 128))
    Mp = _round_up(M, tm_eff)
    n_tiles = Mp // tm_eff
    # Split pass 1 over TensorCores (v7x megacore). No-op on 1-TC chips.
    splits = 2 if (n_tiles % 2 == 0 and n_tiles >= 2) else 1
    tiles_per_split = n_tiles // splits

    # --- glue (plain JAX): lane-dense im2col (27, Mp), channel-major weights --
    xp = jnp.pad(x_nchw, ((0, 0), (0, 0), (1, 1), (1, 1)))        # (N, 3, H+2, W+2)
    taps = [xp[:, :, kh:kh + H, kw:kw + W] for kh in range(3) for kw in range(3)]
    patches = jnp.stack(taps, axis=0)                             # (9, N, 3, H, W)
    patches = patches.transpose(0, 2, 1, 3, 4).reshape(27, M)     # k=(kh*3+kw)*3+cin
    patches = jnp.pad(patches, ((0, 0), (0, Mp - M)))             # zero cols: stats-neutral
    w_mat = w_hwio.reshape(27, C).T                               # (C, 27), same k ordering
    g_col = gamma.reshape(C, 1)
    b_col = beta.reshape(C, 1)
    del bias  # exactly absorbed by the batch mean of training-mode BatchNorm

    # --- pass 1: conv matmul + per-channel (partial) batch statistics ---------
    psum, psq = pl.pallas_call(
        conv_stats_kernel,
        out_shape=(
            jax.ShapeDtypeStruct((splits, C, 1), jnp.float32),
            jax.ShapeDtypeStruct((splits, C, 1), jnp.float32),
        ),
        grid_spec=pltpu.PrefetchScalarGridSpec(
            num_scalar_prefetch=0,
            grid=(splits, tiles_per_split),
            in_specs=[
                pl.BlockSpec((C, 27), lambda s, t: (0, 0)),
                pl.BlockSpec((27, tm_eff),
                             lambda s, t: (0, s * tiles_per_split + t)),
            ],
            out_specs=[
                pl.BlockSpec((1, C, 1), lambda s, t: (s, 0, 0)),
                pl.BlockSpec((1, C, 1), lambda s, t: (s, 0, 0)),
            ],
        ),
        compiler_params=pltpu.CompilerParams(
            dimension_semantics=("parallel", "arbitrary")),
    )(w_mat, patches)

    # --- pass 2: conv tile recompute + fused BN (scale/shift) + ReLU ----------
    out_t = pl.pallas_call(
        functools.partial(conv_bn_relu_kernel, inv_m=1.0 / float(M), eps=eps),
        out_shape=jax.ShapeDtypeStruct((C, Mp), jnp.float32),
        grid_spec=pltpu.PrefetchScalarGridSpec(
            num_scalar_prefetch=0,
            grid=(n_tiles,),
            in_specs=[
                pl.BlockSpec((C, 27), lambda i: (0, 0)),
                pl.BlockSpec((splits, C, 1), lambda i: (0, 0, 0)),
                pl.BlockSpec((splits, C, 1), lambda i: (0, 0, 0)),
                pl.BlockSpec((C, 1), lambda i: (0, 0)),
                pl.BlockSpec((C, 1), lambda i: (0, 0)),
                pl.BlockSpec((27, tm_eff), lambda i: (0, i)),
            ],
            out_specs=pl.BlockSpec((C, tm_eff), lambda i: (0, i)),
        ),
        compiler_params=pltpu.CompilerParams(
            dimension_semantics=("parallel",)),
    )(w_mat, psum, psq, g_col, b_col, patches)

    out = out_t[:, :M].reshape(C, N, H, W)
    return jnp.transpose(out, (1, 0, 2, 3))                       # back to NCHW


# ----------------------------------------------------------------------------
# Pure-JAX reference (for correctness check)
# ----------------------------------------------------------------------------
def reference(x_nchw, w_hwio, bias, gamma, beta, eps=1e-5):
    x = jnp.transpose(x_nchw, (0, 2, 3, 1))
    conv = lax.conv_general_dilated(
        x, w_hwio, window_strides=(1, 1), padding="SAME",
        dimension_numbers=("NHWC", "HWIO", "NHWC")) + bias
    mean = conv.mean(axis=(0, 1, 2))
    var = conv.var(axis=(0, 1, 2))                                # biased, like PyTorch BN fwd
    y = (conv - mean) * lax.rsqrt(var + eps) * gamma + beta
    y = jnp.maximum(y, 0.0)
    return jnp.transpose(y, (0, 3, 1, 2))


if __name__ == "__main__":
    stream_size = 32
    N, Cin, H, W = 2, 3, 16, 16

    key = jax.random.PRNGKey(0)
    kx, kw, kb, kg, kbe = jax.random.split(key, 5)

    x = jax.random.normal(kx, (N, Cin, H, W), dtype=jnp.float32)
    w_hwio = 0.1 * jax.random.normal(kw, (3, 3, Cin, stream_size), dtype=jnp.float32)
    bias = 0.1 * jax.random.normal(kb, (stream_size,), dtype=jnp.float32)
    gamma = 1.0 + 0.1 * jax.random.normal(kg, (stream_size,), dtype=jnp.float32)
    beta = 0.1 * jax.random.normal(kbe, (stream_size,), dtype=jnp.float32)

    out = initial_conv_block(x, w_hwio, bias, gamma, beta)
    out = jax.block_until_ready(out)

    ref = jax.block_until_ready(reference(x, w_hwio, bias, gamma, beta))
    assert out.shape == (N, stream_size, H, W)
    np.testing.assert_allclose(np.asarray(out), np.asarray(ref), rtol=1e-4, atol=1e-4)

    print("KERNEL_OK")
</pallas_src>

<mosaic_0001>
module attributes {stable_mosaic.version = 11 : i64} {
  func.func @conv_stats_kernel(%arg0: i32, %arg1: i32, %arg2: memref<32x27xf32, #tpu.memory_space<vmem>>, %arg3: memref<27x512xf32, #tpu.memory_space<vmem>>, %arg4: memref<1x32x1xf32, #tpu.memory_space<vmem>>, %arg5: memref<1x32x1xf32, #tpu.memory_space<vmem>>) attributes {dimension_semantics = [#tpu.dimension_semantics<parallel>, #tpu.dimension_semantics<arbitrary>], iteration_bounds = array<i64: 1, 1>, scalar_prefetch = 0 : i64, scratch_operands = 0 : i64, tpu.core_type = #tpu.core_type<tc>, window_params = [{pipeline_mode = #tpu.pipeline_mode<synchronous>, transform_indices = @transform_0, window_bounds = array<i64: 32, 27>}, {transform_indices = @transform_1, window_bounds = array<i64: 27, 512>}, {transform_indices = @transform_2, window_bounds = array<i64: 1, 32, 1>}, {transform_indices = @transform_3, window_bounds = array<i64: 1, 32, 1>}]} {
    %c0_i32 = arith.constant 0 : i32
    %0 = arith.cmpi eq, %arg1, %c0_i32 : i32
    %1 = arith.extui %0 : i1 to i32
    %c0_i32_0 = arith.constant 0 : i32
    %2 = arith.cmpi ne, %1, %c0_i32_0 : i32
    scf.if %2 {
      %cst_18 = arith.constant 0.000000e+00 : f32
      %19 = vector.broadcast %cst_18 : f32 to vector<1x32x1xf32>
      %c0_19 = arith.constant 0 : index
      %c0_20 = arith.constant 0 : index
      %c0_21 = arith.constant 0 : index
      %20 = vector.load %arg4[%c0_19, %c0_20, %c0_21] : memref<1x32x1xf32, #tpu.memory_space<vmem>>, vector<1x32x1xf32>
      tpu.vector_store %arg4[%c0_19, %c0_20, %c0_21], %19 {strides = array<i32>} : memref<1x32x1xf32, #tpu.memory_space<vmem>>, vector<1x32x1xf32>,
      %cst_22 = arith.constant 0.000000e+00 : f32
      %21 = vector.broadcast %cst_22 : f32 to vector<1x32x1xf32>
      %c0_23 = arith.constant 0 : index
      %c0_24 = arith.constant 0 : index
      %c0_25 = arith.constant 0 : index
      %22 = vector.load %arg5[%c0_23, %c0_24, %c0_25] : memref<1x32x1xf32, #tpu.memory_space<vmem>>, vector<1x32x1xf32>
      tpu.vector_store %arg5[%c0_23, %c0_24, %c0_25], %21 {strides = array<i32>} : memref<1x32x1xf32, #tpu.memory_space<vmem>>, vector<1x32x1xf32>,
    } else {
    }
    %c0 = arith.constant 0 : index
    %c0_1 = arith.constant 0 : index
    %3 = vector.load %arg2[%c0, %c0_1] : memref<32x27xf32, #tpu.memory_space<vmem>>, vector<32x27xf32>
    %c0_2 = arith.constant 0 : index
    %c0_3 = arith.constant 0 : index
    %4 = vector.load %arg3[%c0_2, %c0_3] : memref<27x512xf32, #tpu.memory_space<vmem>>, vector<27x512xf32>
    %cst = arith.constant dense<0.000000e+00> : vector<32x512xf32>
    %5 = tpu.matmul %3, %4, %cst {dimension_numbers = #tpu.dot_dimension_numbers<[1], [0], [0], [1], [0, 0, 1, 1], [], []>} : vector<32x27xf32>, vector<27x512xf32>, vector<32x512xf32> -> vector<32x512xf32>
    %c0_4 = arith.constant 0 : index
    %c0_5 = arith.constant 0 : index
    %c0_6 = arith.constant 0 : index
    %6 = vector.load %arg4[%c0_4, %c0_5, %c0_6] : memref<1x32x1xf32, #tpu.memory_space<vmem>>, vector<1x32x1xf32>
    %cst_7 = arith.constant dense<0.000000e+00> : vector<32xf32>
    %7 = vector.multi_reduction <add>, %5, %cst_7 [1] : vector<32x512xf32> to vector<32xf32>
    %8 = vector.shape_cast %7 : vector<32xf32> to vector<32x1xf32>
    %9 = vector.shape_cast %8 : vector<32x1xf32> to vector<1x32x1xf32>
    %10 = arith.addf %6, %9 : vector<1x32x1xf32>
    %c0_8 = arith.constant 0 : index
    %c0_9 = arith.constant 0 : index
    %c0_10 = arith.constant 0 : index
    %11 = vector.load %arg4[%c0_8, %c0_9, %c0_10] : memref<1x32x1xf32, #tpu.memory_space<vmem>>, vector<1x32x1xf32>
    tpu.vector_store %arg4[%c0_8, %c0_9, %c0_10], %10 {strides = array<i32>} : memref<1x32x1xf32, #tpu.memory_space<vmem>>, vector<1x32x1xf32>,
    %c0_11 = arith.constant 0 : index
    %c0_12 = arith.constant 0 : index
    %c0_13 = arith.constant 0 : index
    %12 = vector.load %arg5[%c0_11, %c0_12, %c0_13] : memref<1x32x1xf32, #tpu.memory_space<vmem>>, vector<1x32x1xf32>
    %13 = arith.mulf %5, %5 : vector<32x512xf32>
    %cst_14 = arith.constant dense<0.000000e+00> : vector<32xf32>
    %14 = vector.multi_reduction <add>, %13, %cst_14 [1] : vector<32x512xf32> to vector<32xf32>
    %15 = vector.shape_cast %14 : vector<32xf32> to vector<32x1xf32>
    %16 = vector.shape_cast %15 : vector<32x1xf32> to vector<1x32x1xf32>
    %17 = arith.addf %12, %16 : vector<1x32x1xf32>
    %c0_15 = arith.constant 0 : index
    %c0_16 = arith.constant 0 : index
    %c0_17 = arith.constant 0 : index
    %18 = vector.load %arg5[%c0_15, %c0_16, %c0_17] : memref<1x32x1xf32, #tpu.memory_space<vmem>>, vector<1x32x1xf32>
    tpu.vector_store %arg5[%c0_15, %c0_16, %c0_17], %17 {strides = array<i32>} : memref<1x32x1xf32, #tpu.memory_space<vmem>>, vector<1x32x1xf32>,
    return
  }
  func.func @transform_0(%arg0: i32, %arg1: i32) -> (i32, i32) {
    %c0_i32 = arith.constant 0 : i32
    %c0_i32_0 = arith.constant 0 : i32
    %c0_i32_1 = arith.constant 0 : i32
    return %c0_i32, %c0_i32_0 : i32, i32
  }
  func.func @transform_1(%arg0: i32, %arg1: i32) -> (i32, i32) {
    %c1_i32 = arith.constant 1 : i32
    %0 = arith.muli %arg0, %c1_i32 : i32
    %1 = arith.addi %0, %arg1 : i32
    %c0_i32 = arith.constant 0 : i32
    %c0_i32_0 = arith.constant 0 : i32
    return %c0_i32, %1 : i32, i32
  }
  func.func @transform_2(%arg0: i32, %arg1: i32) -> (i32, i32, i32) {
    %c0_i32 = arith.constant 0 : i32
    %c0_i32_0 = arith.constant 0 : i32
    %c0_i32_1 = arith.constant 0 : i32
    return %arg0, %c0_i32, %c0_i32_0 : i32, i32, i32
  }
  func.func @transform_3(%arg0: i32, %arg1: i32) -> (i32, i32, i32) {
    %c0_i32 = arith.constant 0 : i32
    %c0_i32_0 = arith.constant 0 : i32
    %c0_i32_1 = arith.constant 0 : i32
    return %arg0, %c0_i32, %c0_i32_0 : i32, i32, i32
  }
}

</mosaic_0001>

<bundles_post_ra>
// kernel: tpu_custom_call.1
= control target key start
LH: loop header
LB: loop body
LE: loop exit
PB: predicated region body
PF: predicated region fallthrough
CT: control target
= control target key end

     0   :  { %9 = vsyncpa [#allocation3], 0  ;;  %s533_s0 = inlined_call_operand.hbm [shape: f32[32,27], index: 0, kind: input, shape index: {}]   ;;  %s534_s1 = inlined_call_operand.hbm [shape: f32[27,512], index: 1, kind: input, shape index: {}]   ;;  %s535_s2 = inlined_call_operand.vmem [shape: f32[1,32,1], index: 2, kind: output, shape index: {0}]   ;;  %s536_s3 = inlined_call_operand.vmem [shape: f32[1,32,1], index: 3, kind: output, shape index: {1}]  }
   0x1   :  { %s15_s14 = sshll.u32 %s533_s0, 4  ;;  %s16_s14 = int_to_ptr.hbm [resolvable:$true] %s15_s14 }
   0x2   :  { %10 = vsyncpa [#allocation5], 0  ;;  %s396_s15 = smov [#allocation2]   ;;  %s32_s19 = sshll.u32 %s534_s1, 4  ;;  %s33_s19 = int_to_ptr.hbm [resolvable:$true] %s32_s19 }
   0x3   :  { %s17_s16 = sshll.u32 %s396_s15, 4  ;;  %s397_s20 = smov 128   ;;  %s18_s16 = int_to_ptr.vmem [resolvable:$true] %s17_s16 }
   0x4   :  { %s398_s21 = smov 8   ;;  %s399_s22 = smov [#allocation4]  }
   0x5   :  { %23 = dma.hbm_to_vmem [thread:$0]  %s16_s14, 512, %s18_s16, [#allocation3], %s397_s20, %s397_s20, %s398_s21  }
   0x6   :  { %s34_s23 = sshll.u32 %s399_s22, 4  ;;  %s400_s24 = smov 512   ;;  %s35_s23 = int_to_ptr.vmem [resolvable:$true] %s34_s23 }
   0x7   :  { %s401_s25 = smov 32  }
   0x8   :  { %40 = dma.hbm_to_vmem [thread:$0]  %s33_s19, 2048, %s35_s23, [#allocation5], %s400_s24, %s400_s24, %s401_s25  }
   0x9   :  { %392 = dma.done.wait [#allocation3], 512  }
   0xa   :  { %393 = vsyncadd [#allocation3], 4294966784 }
   0xb   :  { %394 = dma.done.wait [#allocation5], 2048  }
   0xc   :  { %395 = vsyncadd [#allocation5], 4294965248  ;;  %vm97_vm0 = vcmask 1042432   ;;  %v82_v0 = vld [vmem:[#allocation4 + $0x70] sm:$0x7]  ;;  %v79_v6 = vld [vmem:[#allocation4 + $0x58] sm:$0xff] }
   0xd   :  { %v78_v1 = vld [vmem:[#allocation4 + $0x50] sm:$0xff]  ;;  %v83_v2 = vld [vmem:[#allocation4 + $0x78] sm:$0x7]  ;;  %327 = vmatpush.msk.msra.mxu2 %vm97_vm0, %v82_v0  ;;  %v80_v3 = vld [vmem:[#allocation4 + $0x60] sm:$0x7]  ;;  %vm84_vm1 = vcmask 220160  }
   0xe   :  { %332 = vmatpush.msk.msra.mxu3 %vm97_vm0, %v83_v2  ;;  %v81_v4 = vld [vmem:[#allocation4 + $0x68] sm:$0x7]  ;;  %v74_v5 = vld [vmem:[#allocation4 + $0x30] sm:$0xff]  ;;  %317 = vmatpush.msk.msra.mxu0 %vm97_vm0, %v80_v3  ;;  %v76_v7 = vld [vmem:[#allocation4 + $0x40] sm:$0xff]  ;;  %vm55_vm2 = vcmask 7168   ;;  %v402_v40 = vmov 0.0  }
   0xf   :  { %322 = vmatpush.msk.msra.mxu1 %vm97_vm0, %v81_v4  ;;  %v77_v8 = vld [vmem:[#allocation4 + $0x48] sm:$0xff]  ;;  %181 = vmatpush.msra.mxu2 %v78_v1  ;;  %v70_v9 = vld [vmem:[#allocation4 + $0x10] sm:$0xff]  ;;  %v75_v10 = vld [vmem:[#allocation4 + $0x38] sm:$0xff]  ;;  %56 = vst.msk [vmem:[%s535_s2] sm:$0xff] %vm55_vm2, %v402_v40 }
  0x10   :  { %210 = vmatpush.msra.mxu3 %v79_v6  ;;  %123 = vmatpush.msra.mxu0 %v76_v7  ;;  %v72_v11 = vld [vmem:[#allocation4 + $0x20] sm:$0xff]  ;;  %v73_v12 = vld [vmem:[#allocation4 + $0x28] sm:$0xff]  ;;  %v71_v13 = vld [vmem:[#allocation4 + $0x18] sm:$0xff]  ;;  %57 = vst.msk [vmem:[%s535_s2 + $0x8] sm:$0xff] %vm55_vm2, %v402_v40 }
  0x11   :  { %152 = vmatpush.msra.mxu1 %v77_v8  ;;  %182 = vmatpush.msra.mxu2 %v74_v5  ;;  %v64_v14 = vld [vmem:[#allocation2] sm:$0xff]  ;;  %v69_v16 = vld [vmem:[#allocation4 + $0x8] sm:$0xff]  ;;  %v66_v18 = vld [vmem:[#allocation2 + $0x10] sm:$0xff]  ;;  %58 = vst.msk [vmem:[%s535_s2 + $0x10] sm:$0xff] %vm55_vm2, %v402_v40 }
  0x12   :  { %211 = vmatpush.msra.mxu3 %v75_v10  ;;  %124 = vmatpush.msra.mxu0 %v72_v11  ;;  %v68_v15 = vld [vmem:[#allocation4] sm:$0xff]  ;;  %v65_v17 = vld [vmem:[#allocation2 + $0x8] sm:$0xff]  ;;  %v67_v19 = vld [vmem:[#allocation2 + $0x18] sm:$0xff]  ;;  %59 = vst.msk [vmem:[%s535_s2 + $0x18] sm:$0xff] %vm55_vm2, %v402_v40 }
  0x13   :  { %153 = vmatpush.msra.mxu1 %v73_v12  ;;  %183 = vmatpush.msra.mxu2 %v70_v9  ;;  %60 = vst.msk [vmem:[%s536_s3] sm:$0xff] %vm55_vm2, %v402_v40 }
  0x14   :  { %212 = vmatpush.msra.mxu3 %v71_v13  ;;  %328 = vmatmul.msk.f32.vlgmr.msra.gmra.mxu2 %vm84_vm1, %v64_v14  ;;  %61 = vst.msk [vmem:[%s536_s3 + $0x8] sm:$0xff] %vm55_vm2, %v402_v40 }
  0x15   :  { %333 = vmatmul.msk.f32.vlgmr.msra.gmra.mxu3 %vm84_vm1, %v64_v14  ;;  %125 = vmatpush.msra.mxu0 %v68_v15  ;;  %62 = vst.msk [vmem:[%s536_s3 + $0x10] sm:$0xff] %vm55_vm2, %v402_v40 }
  0x16   :  { %154 = vmatpush.msra.mxu1 %v69_v16  ;;  %318 = vmatmul.msk.f32.vlgmr.msra.gmra.mxu0 %vm84_vm1, %v64_v14  ;;  %63 = vst.msk [vmem:[%s536_s3 + $0x18] sm:$0xff] %vm55_vm2, %v402_v40  ;;  %v226_v13 = vld [vmem:[%s535_s2] sm:$0xff] }
  0x17   :  { %323 = vmatmul.msk.f32.vlgmr.msra.gmra.mxu1 %vm84_vm1, %v64_v14 }
  0x1a   :  { %v259_v15 = vld [vmem:[%s536_s3] sm:$0xff] }
  0x1c   :  { %329 = vmatmul.msk.f32.gmra.mxu2 %vm84_vm1, %v65_v17 }
  0x1d   :  { %334 = vmatmul.msk.f32.gmra.mxu3 %vm84_vm1, %v65_v17 }
  0x1e   :  { %319 = vmatmul.msk.f32.gmra.mxu0 %vm84_vm1, %v65_v17 }
  0x1f   :  { %324 = vmatmul.msk.f32.gmra.mxu1 %vm84_vm1, %v65_v17 }
  0x24   :  { %330 = vmatmul.msk.f32.gmra.mxu2 %vm84_vm1, %v66_v18 }
  0x25   :  { %335 = vmatmul.msk.f32.gmra.mxu3 %vm84_vm1, %v66_v18 }
  0x26   :  { %320 = vmatmul.msk.f32.gmra.mxu0 %vm84_vm1, %v66_v18 }
  0x27   :  { %325 = vmatmul.msk.f32.gmra.mxu1 %vm84_vm1, %v66_v18 }
  0x2c   :  { %331 = vmatmul.msk.f32.gmra.mxu2 %vm84_vm1, %v67_v19 }
  0x2d   :  { %336 = vmatmul.msk.f32.gmra.mxu3 %vm84_vm1, %v67_v19 }
  0x2e   :  { %321 = vmatmul.msk.f32.gmra.mxu0 %vm84_vm1, %v67_v19 }
  0x2f   :  { %326 = vmatmul.msk.f32.gmra.mxu1 %vm84_vm1, %v67_v19  ;;  %v227_v19 = vld [vmem:[%s535_s2 + $0x8] sm:$0xff] }
  0x93   :  { %v127_v20 = vpop.f32.mrf.mxu0 }
  0x94   :  { %v156_v21 = vpop.f32.mrf.mxu1  ;;  %v263_v22 = vmul.f32 %v127_v20, %v127_v20 }
  0x95   :  { %v230_v23 = vadd.f32 %v156_v21, %v127_v20  ;;  %v264_v24 = vmul.f32 %v156_v21, %v156_v21  ;;  %v260_v21 = vld [vmem:[%s536_s3 + $0x8] sm:$0xff] }
  0x97   :  { %v279_v25 = vadd.f32 %v264_v24, %v263_v22  ;;  %v185_v26 = vpop.f32.mrf.mxu2 }
  0x98   :  { %v214_v27 = vpop.f32.mrf.mxu3  ;;  %v231_v28 = vadd.f32 %v230_v23, %v185_v26  ;;  %v265_v29 = vmul.f32 %v185_v26, %v185_v26 }
  0x99   :  { %v266_v30 = vmul.f32 %v214_v27, %v214_v27 }
  0x9a   :  { %v232_v31 = vadd.f32 %v231_v28, %v214_v27  ;;  %v280_v32 = vadd.f32 %v279_v25, %v265_v29  ;;  %v228_v25 = vld [vmem:[%s535_s2 + $0x10] sm:$0xff] }
  0x9b   :  { %v130_v33 = vpop.f32.mrf.mxu0  ;;  %v261_v27 = vld [vmem:[%s536_s3 + $0x10] sm:$0xff] }
  0x9c   :  { %v159_v34 = vpop.f32.mrf.mxu1  ;;  %233 = vadd.xlane.f32.xlu0 %v232_v31  ;;  %v267_v35 = vmul.f32 %v130_v33, %v130_v33  ;;  %v281_v38 = vadd.f32 %v280_v32, %v266_v30  ;;  %v229_v31 = vld [vmem:[%s535_s2 + $0x18] sm:$0xff] }
  0x9d   :  { %v235_v36 = vadd.f32 %v159_v34, %v130_v33  ;;  %v268_v37 = vmul.f32 %v159_v34, %v159_v34  ;;  %v262_v34 = vld [vmem:[%s536_s3 + $0x18] sm:$0xff] }
  0x9e   :  { %282 = vadd.xlane.f32.xlu2 %v281_v38 }
  0x9f   :  { %v284_v39 = vadd.f32 %v268_v37, %v267_v35  ;;  %v188_v41 = vpop.f32.mrf.mxu2 }
  0xa0   :  { %v217_v42 = vpop.f32.mrf.mxu3  ;;  %v236_v43 = vadd.f32 %v235_v36, %v188_v41  ;;  %v269_v44 = vmul.f32 %v188_v41, %v188_v41 }
  0xa1   :  { %v270_v45 = vmul.f32 %v217_v42, %v217_v42 }
  0xa2   :  { %v237_v46 = vadd.f32 %v236_v43, %v217_v42  ;;  %v285_v47 = vadd.f32 %v284_v39, %v269_v44 }
  0xa3   :  { %v133_v48 = vpop.f32.mrf.mxu0 }
  0xa4   :  { %v162_v49 = vpop.f32.mrf.mxu1  ;;  %238 = vadd.xlane.f32.xlu0 %v237_v46  ;;  %v271_v50 = vmul.f32 %v133_v48, %v133_v48  ;;  %v286_v53 = vadd.f32 %v285_v47, %v270_v45 }
  0xa5   :  { %v240_v51 = vadd.f32 %v162_v49, %v133_v48  ;;  %v272_v52 = vmul.f32 %v162_v49, %v162_v49 }
  0xa6   :  { %287 = vadd.xlane.f32.xlu2 %v286_v53 }
  0xa7   :  { %v289_v54 = vadd.f32 %v272_v52, %v271_v50  ;;  %v191_v55 = vpop.f32.mrf.mxu2 }
  0xa8   :  { %v220_v56 = vpop.f32.mrf.mxu3  ;;  %v241_v57 = vadd.f32 %v240_v51, %v191_v55  ;;  %v273_v58 = vmul.f32 %v191_v55, %v191_v55 }
  0xa9   :  { %v274_v59 = vmul.f32 %v220_v56, %v220_v56 }
  0xaa   :  { %v242_v60 = vadd.f32 %v241_v57, %v220_v56  ;;  %v290_v61 = vadd.f32 %v289_v54, %v273_v58 }
  0xab   :  { %v136_v62 = vpop.f32.mrf.mxu0 }
  0xac   :  { %v165_v63 = vpop.f32.mrf.mxu1  ;;  %243 = vadd.xlane.f32.xlu1 %v242_v60  ;;  %v291_v1 = vadd.f32 %v290_v61, %v274_v59  ;;  %v275_v2 = vmul.f32 %v136_v62, %v136_v62 }
  0xad   :  { %v245_v0 = vadd.f32 %v165_v63, %v136_v62  ;;  %v276_v3 = vmul.f32 %v165_v63, %v165_v63 }
  0xae   :  { %292 = vadd.xlane.f32.xlu0 %v291_v1 }
  0xaf   :  { %v194_v4 = vpop.f32.mrf.mxu2  ;;  %v294_v7 = vadd.f32 %v276_v3, %v275_v2 }
  0xb0   :  { %v223_v5 = vpop.f32.mrf.mxu3  ;;  %v246_v6 = vadd.f32 %v245_v0, %v194_v4  ;;  %v277_v8 = vmul.f32 %v194_v4, %v194_v4 }
  0xb1   :  { %v278_v11 = vmul.f32 %v223_v5, %v223_v5 }
  0xb2   :  { %v247_v9 = vadd.f32 %v246_v6, %v223_v5  ;;  %v295_v10 = vadd.f32 %v294_v7, %v277_v8 }
  0xb4   :  { %248 = vadd.xlane.f32.xlu1 %v247_v9  ;;  %v296_v12 = vadd.f32 %v295_v10, %v278_v11 }
  0xbc   :  { %297 = vadd.xlane.f32.xlu1 %v296_v12 }
 0x10f   :  { %v234_v14 = vpop.xlane.xlu0 %233 }
 0x110   :  { %v250_v16 = vadd.f32 %v234_v14, %v226_v13 }
 0x111   :  { %v283_v17 = vpop.xlane.xlu2 %282 }
 0x112   :  { %255 = vst.msk [vmem:[%s535_s2] sm:$0xff] %vm55_vm2, %v250_v16  ;;  %v299_v18 = vadd.f32 %v283_v17, %v259_v15 }
 0x114   :  { %303 = vst.msk [vmem:[%s536_s3] sm:$0xff] %vm55_vm2, %v299_v18 }
 0x117   :  { %v239_v20 = vpop.xlane.xlu0 %238 }
 0x118   :  { %v251_v22 = vadd.f32 %v239_v20, %v227_v19 }
 0x119   :  { %v288_v23 = vpop.xlane.xlu2 %287 }
 0x11a   :  { %256 = vst.msk [vmem:[%s535_s2 + $0x8] sm:$0xff] %vm55_vm2, %v251_v22  ;;  %v300_v24 = vadd.f32 %v288_v23, %v260_v21 }
 0x11c   :  { %304 = vst.msk [vmem:[%s536_s3 + $0x8] sm:$0xff] %vm55_vm2, %v300_v24 }
 0x11f   :  { %v244_v26 = vpop.xlane.xlu1 %243 }
 0x120   :  { %v252_v28 = vadd.f32 %v244_v26, %v228_v25 }
 0x121   :  { %v293_v29 = vpop.xlane.xlu0 %292 }
 0x122   :  { %257 = vst.msk [vmem:[%s535_s2 + $0x10] sm:$0xff] %vm55_vm2, %v252_v28  ;;  %v301_v30 = vadd.f32 %v293_v29, %v261_v27 }
 0x124   :  { %305 = vst.msk [vmem:[%s536_s3 + $0x10] sm:$0xff] %vm55_vm2, %v301_v30 }
 0x127   :  { %v249_v32 = vpop.xlane.xlu1 %248 }
 0x128   :  { %v253_v33 = vadd.f32 %v249_v32, %v229_v31 }
 0x12a   :  { %258 = vst.msk [vmem:[%s535_s2 + $0x18] sm:$0xff] %vm55_vm2, %v253_v33 }
 0x12f   :  { %v298_v35 = vpop.xlane.xlu1 %297 }
 0x130   :  { %v302_v36 = vadd.f32 %v298_v35, %v262_v34 }
 0x132   :  { %306 = vst.msk [vmem:[%s536_s3 + $0x18] sm:$0xff] %vm55_vm2, %v302_v36 }
 0x133   :  { %315 = vsyncpa [#allocation3], 1 }
 0x134   :  { %316 = vsyncpa [#allocation5], 1 }

</bundles_post_ra>
